<compile_context>
chip_gen: v7x
topology: tpu7x:2x2x1
jax: 0.10.0
libtpu: 0.0.40
codegen_flags: <defaults>
</compile_context>

<pallas_src>
import functools

import jax
import jax.numpy as jnp
from jax import lax
from jax.experimental import pallas as pl
from jax.experimental.pallas import tpu as pltpu

_MIB = 1024 * 1024


# ----------------------------- chip / tiling helpers -----------------------------

def _round_up(x, m):
    return ((x + m - 1) // m) * m


def _chip_kind():
    try:
        return jax.devices()[0].device_kind.lower()
    except Exception:
        return ""


def _mxu_align():
    # v5e MXU is 128x128; v6e/v7x MXUs are 256 wide.
    return 128 if "v5" in _chip_kind() else 256


def _num_tensorcores():
    return 2 if "v7" in _chip_kind() else 1


def _vmem_budget_bytes():
    kind = _chip_kind()
    if "v5" in kind or "v6" in kind:
        return 72 * _MIB          # 128 MiB physical VMEM
    return 44 * _MIB              # v7x (or unknown): 64 MiB physical, keep headroom


def _vmem_limit_bytes():
    kind = _chip_kind()
    if "v5" in kind or "v6" in kind:
        return 100 * _MIB
    return 56 * _MIB


def _sublane_align(dtype):
    # f32 -> 8, bf16 -> 16, int8/fp8 -> 32 (min second-to-last tile dim).
    return max(8, 32 // jnp.dtype(dtype).itemsize)


def _round_lane(dim, mxu):
    # Lane (last-dim) padding: at least 128; round to MXU width when larger.
    return 128 if dim <= 128 else _round_up(dim, mxu)


def _footprint_bytes(tm, tn, tk, itemsize, single_k):
    """Conservative VMEM estimate: double-buffered blocks + accumulators + temps."""
    bounds = 2 * 2 * tm * tk * itemsize          # lb, ub blocks (double-buffered)
    weight = 2 * tn * tk * itemsize              # weight block (double-buffered)
    bias = 2 * tn * itemsize
    outs = 2 * 2 * tm * tn * itemsize            # new_lb, new_ub blocks
    accs = 0 if single_k else 2 * tm * tn * 4    # f32 accumulators (multi-K only)
    temps = tn * tk * 4 + 2 * tm * tk * 4        # |W|, center, radius temporaries
    return bounds + weight + bias + outs + accs + temps


# ----------------------------------- kernels --------------------------------------

def _interval_dots(lb, ub, w, compute_dtype):
    c = (lb + ub) * 0.5                      # center
    r = (ub - lb) * 0.5                      # radius (>= 0)
    aw = jnp.abs(w)                          # VPU; hides under MXU cycles
    if compute_dtype is not None:
        c = c.astype(compute_dtype)
        r = r.astype(compute_dtype)
        w = w.astype(compute_dtype)
        aw = aw.astype(compute_dtype)
    # Contract the shared in_features axis: (tm, tk) x (tn, tk) -> (tm, tn).
    dn = (((1,), (1,)), ((), ()))
    cw = lax.dot_general(c, w, dn, preferred_element_type=jnp.float32)
    ra = lax.dot_general(r, aw, dn, preferred_element_type=jnp.float32)
    return cw, ra


def _abstract_linear_kernel_single(lb_ref, ub_ref, w_ref, b_ref,
                                   new_lb_ref, new_ub_ref, *, compute_dtype):
    """Whole-K-resident path: no accumulators, write the output tile directly."""
    cw, ra = _interval_dots(lb_ref[...], ub_ref[...], w_ref[...], compute_dtype)
    b = b_ref[...].astype(jnp.float32)       # (1, tn) broadcasts over rows
    new_lb_ref[...] = (cw - ra + b).astype(new_lb_ref.dtype)
    new_ub_ref[...] = (cw + ra + b).astype(new_ub_ref.dtype)


def _abstract_linear_kernel_multi(lb_ref, ub_ref, w_ref, b_ref,
                                  new_lb_ref, new_ub_ref,
                                  c_acc, r_acc, *, compute_dtype):
    """Tiled-K path: accumulate over the (last, 'arbitrary') K grid axis."""
    kk = pl.program_id(2)

    @pl.when(kk == 0)
    def _init():
        c_acc[...] = jnp.zeros_like(c_acc)
        r_acc[...] = jnp.zeros_like(r_acc)

    cw, ra = _interval_dots(lb_ref[...], ub_ref[...], w_ref[...], compute_dtype)
    c_acc[...] += cw
    r_acc[...] += ra

    @pl.when(kk == pl.num_programs(2) - 1)
    def _finalize():
        b = b_ref[...].astype(jnp.float32)
        new_lb_ref[...] = (c_acc[...] - r_acc[...] + b).astype(new_lb_ref.dtype)
        new_ub_ref[...] = (c_acc[...] + r_acc[...] + b).astype(new_ub_ref.dtype)


# ------------------------------------ impl ----------------------------------------

@functools.partial(jax.jit,
                   static_argnames=("out_features", "tm", "tn", "tk", "compute_dtype"))
def _abstract_linear_impl(lb, ub, w_pad, b_pad, *, out_features, tm, tn, tk,
                          compute_dtype):
    n, k = lb.shape
    out_pad, k_pad = w_pad.shape
    dtype = lb.dtype
    itemsize = jnp.dtype(dtype).itemsize

    n_pad = _round_up(n, tm)
    # Zero padding is semantically inert: padded K columns contribute 0 to both
    # matmuls; padded rows / output columns are sliced off below.
    if n_pad != n or k_pad != k:
        lb = jnp.pad(lb, ((0, n_pad - n), (0, k_pad - k)))
        ub = jnp.pad(ub, ((0, n_pad - n), (0, k_pad - k)))

    gm, gn, gk = n_pad // tm, out_pad // tn, k_pad // tk

    cost = pl.CostEstimate(
        flops=4 * n_pad * out_pad * k_pad,                     # two MXU matmuls
        transcendentals=0,
        bytes_accessed=(2 * n_pad * k_pad + out_pad * k_pad + out_pad
                        + 2 * n_pad * out_pad) * itemsize,
    )
    cparams = pltpu.CompilerParams(
        dimension_semantics=(("parallel", "parallel") if gk == 1
                             else ("parallel", "parallel", "arbitrary")),
        vmem_limit_bytes=_vmem_limit_bytes(),
    )
    out_shape = (jax.ShapeDtypeStruct((n_pad, out_pad), dtype),
                 jax.ShapeDtypeStruct((n_pad, out_pad), dtype))

    if gk == 1:
        kern = functools.partial(_abstract_linear_kernel_single,
                                 compute_dtype=compute_dtype)
        new_lb_p, new_ub_p = pl.pallas_call(
            kern,
            out_shape=out_shape,
            grid_spec=pltpu.PrefetchScalarGridSpec(
                num_scalar_prefetch=0,
                grid=(gm, gn),
                in_specs=[
                    pl.BlockSpec((tm, tk), lambda i, j: (i, 0)),    # lb
                    pl.BlockSpec((tm, tk), lambda i, j: (i, 0)),    # ub
                    pl.BlockSpec((tn, tk), lambda i, j: (j, 0)),    # weight (out,in)
                    pl.BlockSpec((1, tn), lambda i, j: (0, j)),     # bias
                ],
                out_specs=[
                    pl.BlockSpec((tm, tn), lambda i, j: (i, j)),    # new_lb
                    pl.BlockSpec((tm, tn), lambda i, j: (i, j)),    # new_ub
                ],
            ),
            compiler_params=cparams,
            cost_estimate=cost,
        )(lb, ub, w_pad, b_pad)
    else:
        kern = functools.partial(_abstract_linear_kernel_multi,
                                 compute_dtype=compute_dtype)
        new_lb_p, new_ub_p = pl.pallas_call(
            kern,
            out_shape=out_shape,
            grid_spec=pltpu.PrefetchScalarGridSpec(
                num_scalar_prefetch=0,
                grid=(gm, gn, gk),
                in_specs=[
                    pl.BlockSpec((tm, tk), lambda i, j, kk: (i, kk)),   # lb
                    pl.BlockSpec((tm, tk), lambda i, j, kk: (i, kk)),   # ub
                    pl.BlockSpec((tn, tk), lambda i, j, kk: (j, kk)),   # weight
                    pl.BlockSpec((1, tn), lambda i, j, kk: (0, j)),     # bias
                ],
                out_specs=[
                    pl.BlockSpec((tm, tn), lambda i, j, kk: (i, j)),    # new_lb
                    pl.BlockSpec((tm, tn), lambda i, j, kk: (i, j)),    # new_ub
                ],
                scratch_shapes=[
                    pltpu.VMEM((tm, tn), jnp.float32),                  # center acc
                    pltpu.VMEM((tm, tn), jnp.float32),                  # radius acc
                ],
            ),
            compiler_params=cparams,
            cost_estimate=cost,
        )(lb, ub, w_pad, b_pad)

    if n_pad != n or out_pad != out_features:
        new_lb_p = new_lb_p[:n, :out_features]
        new_ub_p = new_ub_p[:n, :out_features]
    return new_lb_p, new_ub_p


# ---------------------------------- public API -------------------------------------

def make_abstract_linear(weight, bias=None, *, tm=None, tn=None, tk=None,
                         compute_dtype=None):
    """Prepare an interval-linear layer once (pad weight/bias, pick tiles).

    Returns fn(lb, ub) -> (new_lb, new_ub). Reuse the returned closure across
    many (lb, ub) batches so the weight padding / tile selection is paid once.
    compute_dtype=jnp.bfloat16 enables faster MXU matmuls (f32 accumulate) but
    loosens bit-level soundness of the bounds -- leave None for verification.
    """
    weight = jnp.asarray(weight)
    out_features, in_features = weight.shape
    w_dtype = weight.dtype
    itemsize = jnp.dtype(w_dtype).itemsize
    sub = _sublane_align(w_dtype)
    mxu = _mxu_align()
    budget = _vmem_budget_bytes()
    tcs = _num_tensorcores()

    # Validate explicit tile overrides against lane/sublane tiling constraints.
    if tm is not None and (tm <= 0 or tm % sub != 0):
        raise ValueError(f"tm must be a positive multiple of {sub}, got {tm}")
    for name, v in (("tn", tn), ("tk", tk)):
        if v is not None and (v <= 0 or v % 128 != 0):
            raise ValueError(f"{name} must be a positive multiple of 128, got {v}")

    out_full = _round_lane(out_features, mxu)
    k_full = _round_lane(in_features, mxu)
    tm_hint = tm if tm is not None else 512

    if tn is None and tk is None:
        # Fast path: whole weight resident in VMEM -> K grid axis collapses to
        # one step, the weight/bias blocks are DMA'd exactly once, and the
        # accumulators / finalize branch disappear.
        if _footprint_bytes(tm_hint, out_full, k_full, itemsize, True) <= budget:
            tn_sel, tk_sel = out_full, k_full
        else:
            tn_sel, tk_sel = min(out_full, 1024), min(k_full, 512)
            while _footprint_bytes(tm_hint, tn_sel, tk_sel, itemsize,
                                   tk_sel >= k_full) > budget:
                if tk_sel >= tn_sel and tk_sel > 128:
                    tk_sel = max(128, (tk_sel // 2) // 128 * 128)
                elif tn_sel > 128:
                    tn_sel = max(128, (tn_sel // 2) // 128 * 128)
                else:
                    break
    else:
        tn_sel = tn if tn is not None else min(out_full, 1024)
        tk_sel = tk if tk is not None else min(k_full, 512)

    out_pad = _round_up(out_features, tn_sel)
    k_pad = _round_up(in_features, tk_sel)

    # One-time weight / bias padding, hoisted out of the per-call jit path.
    w_pad = weight
    if (out_pad, k_pad) != (out_features, in_features):
        w_pad = jnp.pad(weight,
                        ((0, out_pad - out_features), (0, k_pad - in_features)))
    if bias is None:
        b_pad = jnp.zeros((1, out_pad), dtype=w_dtype)
    else:
        b_arr = jnp.asarray(bias).astype(w_dtype)
        b_pad = jnp.pad(b_arr, (0, out_pad - out_features)).reshape(1, out_pad)

    single_k = (k_pad // tk_sel) == 1
    grid_n = out_pad // tn_sel

    def apply(lb, ub):
        lb = jnp.asarray(lb)
        ub = jnp.asarray(ub)
        if lb.shape != ub.shape or lb.ndim != 2 or lb.shape[1] != in_features:
            raise ValueError("lb/ub must both be (num_nodes, in_features)")
        n = lb.shape[0]

        if tm is not None:
            tm_call = tm
        else:
            tm_call = min(512, _round_up(n, sub))
            while (_footprint_bytes(tm_call, tn_sel, tk_sel, itemsize, single_k)
                   > budget and tm_call > sub):
                tm_call = max(sub, (tm_call // 2) // sub * sub)
            # v7x has 2 TensorCores: make sure the 'parallel' axes expose >= 2
            # blocks so the grid can be sharded across both cores.
            gm = _round_up(n, tm_call) // tm_call
            if tcs >= 2 and gm * grid_n == 1 and n > sub:
                tm_call = max(sub, _round_up((n + 1) // 2, sub))

        return _abstract_linear_impl(
            lb, ub, w_pad, b_pad,
            out_features=out_features, tm=tm_call, tn=tn_sel, tk=tk_sel,
            compute_dtype=compute_dtype)

    return apply


def abstract_linear(lb, ub, weight, bias=None, *, tm=None, tn=None, tk=None,
                    compute_dtype=None):
    """One-shot convenience wrapper (prefer make_abstract_linear for reuse)."""
    layer = make_abstract_linear(weight, bias, tm=tm, tn=tn, tk=tk,
                                 compute_dtype=compute_dtype)
    return layer(lb, ub)


def _reference(lb, ub, weight, bias):
    # Pure-JAX reference, same math as the PyTorch module (pos/neg form).
    w_t = weight.T
    pos = jnp.where(w_t > 0, w_t, 0.0)
    neg = jnp.where(w_t < 0, w_t, 0.0)
    b = 0.0 if bias is None else bias
    return lb @ pos + ub @ neg + b, ub @ pos + lb @ neg + b


# TODO(synk): NodeIntervalElement / edge_index plumbing is host-side bookkeeping
# carried through unchanged by the PyTorch forward; no kernel work required.

if __name__ == "__main__":
    key = jax.random.PRNGKey(0)
    k_x, k_eps, k_w, k_b = jax.random.split(key, 4)

    # --- Small demo consistent with the module (node features -> linear) ---
    num_nodes, in_features, out_features = 8, 32, 32
    weight = jax.random.normal(k_w, (out_features, in_features), jnp.float32) * 0.1
    bias = jax.random.normal(k_b, (out_features,), jnp.float32) * 0.1
    x = jax.random.normal(k_x, (num_nodes, in_features), jnp.float32)
    eps = jnp.abs(jax.random.normal(k_eps, (num_nodes, in_features), jnp.float32)) * 0.05
    lb, ub = x - eps, x + eps

    layer = make_abstract_linear(weight, bias)     # pad + tile-select once, reuse
    new_lb, new_ub = layer(lb, ub)
    jax.block_until_ready((new_lb, new_ub))

    ref_lb, ref_ub = _reference(lb, ub, weight, bias)
    assert new_lb.shape == (num_nodes, out_features)
    assert new_ub.shape == (num_nodes, out_features)
    assert jnp.allclose(new_lb, ref_lb, atol=1e-5, rtol=1e-5)
    assert jnp.allclose(new_ub, ref_ub, atol=1e-5, rtol=1e-5)
    assert bool(jnp.all(new_lb <= new_ub + 1e-6))

    # --- Non-aligned shapes + explicit small tiles -> multi-K accumulation path ---
    n2, in2, out2 = 40, 200, 300
    k2_x, k2_eps, k2_w, k2_b = jax.random.split(jax.random.PRNGKey(1), 4)
    w2 = jax.random.normal(k2_w, (out2, in2), jnp.float32) * 0.05
    b2 = jax.random.normal(k2_b, (out2,), jnp.float32) * 0.05
    x2 = jax.random.normal(k2_x, (n2, in2), jnp.float32)
    e2 = jnp.abs(jax.random.normal(k2_eps, (n2, in2), jnp.float32)) * 0.02
    lb2, ub2 = x2 - e2, x2 + e2

    nl2, nu2 = abstract_linear(lb2, ub2, w2, b2, tm=8, tn=128, tk=128)
    jax.block_until_ready((nl2, nu2))
    rl2, ru2 = _reference(lb2, ub2, w2, b2)
    assert jnp.allclose(nl2, rl2, atol=1e-5, rtol=1e-5)
    assert jnp.allclose(nu2, ru2, atol=1e-5, rtol=1e-5)
    assert bool(jnp.all(nl2 <= nu2 + 1e-6))

    # --- Same layer, auto tiles (whole-weight-resident single-K fast path), no bias ---
    nl3, nu3 = abstract_linear(lb2, ub2, w2, None)
    jax.block_until_ready((nl3, nu3))
    rl3, ru3 = _reference(lb2, ub2, w2, None)
    assert jnp.allclose(nl3, rl3, atol=1e-5, rtol=1e-5)
    assert jnp.allclose(nu3, ru3, atol=1e-5, rtol=1e-5)

    print("KERNEL_OK")
</pallas_src>

<mosaic_0001>
module attributes {stable_mosaic.version = 11 : i64} {
  func.func @_abstract_linear_kernel_single(%arg0: i32, %arg1: i32, %arg2: memref<8x128xf32, #tpu.memory_space<vmem>>, %arg3: memref<8x128xf32, #tpu.memory_space<vmem>>, %arg4: memref<128x128xf32, #tpu.memory_space<vmem>>, %arg5: memref<1x128xf32, #tpu.memory_space<vmem>>, %arg6: memref<8x128xf32, #tpu.memory_space<vmem>>, %arg7: memref<8x128xf32, #tpu.memory_space<vmem>>) attributes {dimension_semantics = [#tpu.dimension_semantics<parallel>, #tpu.dimension_semantics<parallel>], iteration_bounds = array<i64: 1, 1>, scalar_prefetch = 0 : i64, scratch_operands = 0 : i64, tpu.core_type = #tpu.core_type<tc>, window_params = [{transform_indices = @transform_0, window_bounds = array<i64: 8, 128>}, {transform_indices = @transform_1, window_bounds = array<i64: 8, 128>}, {transform_indices = @transform_2, window_bounds = array<i64: 128, 128>}, {transform_indices = @transform_3, window_bounds = array<i64: 1, 128>}, {transform_indices = @transform_4, window_bounds = array<i64: 8, 128>}, {transform_indices = @transform_5, window_bounds = array<i64: 8, 128>}]} {
    %c0 = arith.constant 0 : index
    %c0_0 = arith.constant 0 : index
    %0 = vector.load %arg2[%c0, %c0_0] : memref<8x128xf32, #tpu.memory_space<vmem>>, vector<8x128xf32>
    %c0_1 = arith.constant 0 : index
    %c0_2 = arith.constant 0 : index
    %1 = vector.load %arg3[%c0_1, %c0_2] : memref<8x128xf32, #tpu.memory_space<vmem>>, vector<8x128xf32>
    %c0_3 = arith.constant 0 : index
    %c0_4 = arith.constant 0 : index
    %2 = vector.load %arg4[%c0_3, %c0_4] : memref<128x128xf32, #tpu.memory_space<vmem>>, vector<128x128xf32>
    %3 = arith.addf %0, %1 : vector<8x128xf32>
    %cst = arith.constant 5.000000e-01 : f32
    %4 = vector.broadcast %cst : f32 to vector<8x128xf32>
    %5 = arith.mulf %3, %4 : vector<8x128xf32>
    %6 = arith.subf %1, %0 : vector<8x128xf32>
    %cst_5 = arith.constant 5.000000e-01 : f32
    %7 = vector.broadcast %cst_5 : f32 to vector<8x128xf32>
    %8 = arith.mulf %6, %7 : vector<8x128xf32>
    %9 = math.absf %2 : vector<128x128xf32>
    %cst_6 = arith.constant dense<0.000000e+00> : vector<8x128xf32>
    %10 = tpu.matmul %5, %2, %cst_6 {dimension_numbers = #tpu.dot_dimension_numbers<[1], [1], [0], [0], [0, 0, 1, 0], [], []>} : vector<8x128xf32>, vector<128x128xf32>, vector<8x128xf32> -> vector<8x128xf32>
    %cst_7 = arith.constant dense<0.000000e+00> : vector<8x128xf32>
    %11 = tpu.matmul %8, %9, %cst_7 {dimension_numbers = #tpu.dot_dimension_numbers<[1], [1], [0], [0], [0, 0, 1, 0], [], []>} : vector<8x128xf32>, vector<128x128xf32>, vector<8x128xf32> -> vector<8x128xf32>
    %c0_8 = arith.constant 0 : index
    %c0_9 = arith.constant 0 : index
    %12 = vector.load %arg5[%c0_8, %c0_9] : memref<1x128xf32, #tpu.memory_space<vmem>>, vector<1x128xf32>
    %13 = arith.subf %10, %11 : vector<8x128xf32>
    %14 = vector.broadcast %12 : vector<1x128xf32> to vector<8x128xf32>
    %15 = arith.addf %13, %14 : vector<8x128xf32>
    %c0_10 = arith.constant 0 : index
    %c0_11 = arith.constant 0 : index
    %16 = vector.load %arg6[%c0_10, %c0_11] : memref<8x128xf32, #tpu.memory_space<vmem>>, vector<8x128xf32>
    tpu.vector_store %arg6[%c0_10, %c0_11], %15 {strides = array<i32>} : memref<8x128xf32, #tpu.memory_space<vmem>>, vector<8x128xf32>,
    %17 = arith.addf %10, %11 : vector<8x128xf32>
    %18 = vector.broadcast %12 : vector<1x128xf32> to vector<8x128xf32>
    %19 = arith.addf %17, %18 : vector<8x128xf32>
    %c0_12 = arith.constant 0 : index
    %c0_13 = arith.constant 0 : index
    %20 = vector.load %arg7[%c0_12, %c0_13] : memref<8x128xf32, #tpu.memory_space<vmem>>, vector<8x128xf32>
    tpu.vector_store %arg7[%c0_12, %c0_13], %19 {strides = array<i32>} : memref<8x128xf32, #tpu.memory_space<vmem>>, vector<8x128xf32>,
    return
  }
  func.func @transform_0(%arg0: i32, %arg1: i32) -> (i32, i32) {
    %c0_i32 = arith.constant 0 : i32
    %c0_i32_0 = arith.constant 0 : i32
    return %arg0, %c0_i32 : i32, i32
  }
  func.func @transform_1(%arg0: i32, %arg1: i32) -> (i32, i32) {
    %c0_i32 = arith.constant 0 : i32
    %c0_i32_0 = arith.constant 0 : i32
    return %arg0, %c0_i32 : i32, i32
  }
  func.func @transform_2(%arg0: i32, %arg1: i32) -> (i32, i32) {
    %c0_i32 = arith.constant 0 : i32
    %c0_i32_0 = arith.constant 0 : i32
    return %arg1, %c0_i32 : i32, i32
  }
  func.func @transform_3(%arg0: i32, %arg1: i32) -> (i32, i32) {
    %c0_i32 = arith.constant 0 : i32
    %c0_i32_0 = arith.constant 0 : i32
    return %c0_i32, %arg1 : i32, i32
  }
  func.func @transform_4(%arg0: i32, %arg1: i32) -> (i32, i32) {
    %c0_i32 = arith.constant 0 : i32
    return %arg0, %arg1 : i32, i32
  }
  func.func @transform_5(%arg0: i32, %arg1: i32) -> (i32, i32) {
    %c0_i32 = arith.constant 0 : i32
    return %arg0, %arg1 : i32, i32
  }
}

</mosaic_0001>

<bundles_post_ra>
// kernel: _abstract_linear_impl.1
= control target key start
LH: loop header
LB: loop body
LE: loop exit
PB: predicated region body
PF: predicated region fallthrough
CT: control target
= control target key end

     0   :  { %11 = vsyncpa [#allocation3], 0  ;;  %s587_s0 = inlined_call_operand.vmem [shape: f32[8,128], index: 0, kind: input, shape index: {}]   ;;  %s588_s1 = inlined_call_operand.vmem [shape: f32[8,128], index: 1, kind: input, shape index: {}]   ;;  %s589_s2 = inlined_call_operand.hbm [shape: f32[128,128], index: 2, kind: input, shape index: {}]   ;;  %s590_s3 = inlined_call_operand.vmem [shape: f32[1,128], index: 3, kind: input, shape index: {}]   ;;  %s591_s4 = inlined_call_operand.hbm [shape: f32[8,128], index: 4, kind: output, shape index: {0}]   ;;  %s592_s5 = inlined_call_operand.hbm [shape: f32[8,128], index: 5, kind: output, shape index: {1}]  }
   0x1   :  { %12 = vsyncpa [#allocation4], 0 }
   0x2   :  { %13 = vsyncpa [#allocation7], 0  ;;  %s488_s18 = smov [#allocation2]   ;;  %s416_s22 = scalar_lea.hbm %s589_s2, 2048 }
   0x3   :  { %s23_s19 = sshll.u32 %s488_s18, 4  ;;  %p417_p0 = scmp.ne.s32.totalorder %s589_s2, %s416_s22  ;;  %s24_s19 = int_to_ptr.vmem [resolvable:$true] %s23_s19 }
   0x4   :  { %p420_p1 = scmp.lt.u32.totalorder %s416_s22, %s589_s2 }
   0x6   :  { %p422_p2 = pnand %p420_p1, %p417_p0 }
   0x8   :  { %425 = shalt.err (!%p422_p2)
}
   0x9   :  { %s426_s27 = scalar_lea.vmem %s24_s19, 2048  ;;  %p431_p4 = scmp.lt.s32.totalorder %s24_s19, %s24_s19 }
   0xa   :  { %p427_p3 = scmp.ne.s32.totalorder %s24_s19, %s426_s27  ;;  %p432_p5 = scmp.lt.s32.totalorder %s426_s27, %s426_s27 }
   0xc   :  { %p433_p6 = por %p432_p5, %p431_p4 }
   0xe   :  { %p434_p7 = pnand %p433_p6, %p427_p3 }
  0x10   :  { %437 = shalt.err (!%p434_p7)
}
  0x11   :  { %s489_s28 = smov 128   ;;  %s490_s29 = smov 8  }
  0x12   :  { %29 = dma.hbm_to_vmem [thread:$0]  %s589_s2, 2048, %s24_s19, [#allocation3], %s489_s28, %s489_s28, %s490_s29  }
  0x13   :  { %482 = dma.done.wait [#allocation3], 2048  }
  0x14   :  { %483 = vsyncadd [#allocation3], 4294965248  ;;  %v491_v0 = vmov 0.0|0.0   ;;  %vm492_vm0 = vmmov 0   ;;  %v493_v1 = vmov 0.0   ;;  %v37_v2 = vld [vmem:[#allocation2] sm:$0xff] }
  0x15   :  { %360 = vmatprep.subr.bf16.mxu0 %v491_v0  ;;  %384 = vmatprep.subr.bf16.mxu1 %v491_v0  ;;  %v38_v3 = vld [vmem:[#allocation2 + $0x8] sm:$0xff]  ;;  %v57_v5 = vand.u32 2147483647, %v37_v2  ;;  %v39_v7 = vld [vmem:[#allocation2 + $0x10] sm:$0xff]  ;;  %v40_v8 = vld [vmem:[#allocation2 + $0x18] sm:$0xff] }
  0x16   :  { %322 = vmatprep.mubr.msk.f32.mxu0 %vm492_vm0, %v493_v1  ;;  %357 = vmatprep.mubr.msk.f32.mxu1 %vm492_vm0, %v493_v1  ;;  %v361_v4 = vpack.c.bf16 %v38_v3, %v37_v2  ;;  %v58_v6 = vand.u32 2147483647, %v38_v3  ;;  %v59_v10 = vand.u32 2147483647, %v39_v7  ;;  %v60_v11 = vand.u32 2147483647, %v40_v8 }
  0x17   :  { %v364_v12 = vpack.c.bf16 %v40_v8, %v39_v7  ;;  %v41_v14 = vld [vmem:[#allocation2 + $0x20] sm:$0xff]  ;;  %v42_v15 = vld [vmem:[#allocation2 + $0x28] sm:$0xff]  ;;  %v43_v20 = vld [vmem:[#allocation2 + $0x30] sm:$0xff] }
  0x18   :  { %362 = vmatpush3.bf16.xpose.msra.mxu0 %v361_v4  ;;  %v385_v9 = vpack.c.bf16 %v58_v6, %v57_v5  ;;  %v388_v13 = vpack.c.bf16 %v60_v11, %v59_v10  ;;  %v61_v16 = vand.u32 2147483647, %v41_v14  ;;  %v62_v17 = vand.u32 2147483647, %v42_v15  ;;  %v44_v21 = vld [vmem:[#allocation2 + $0x38] sm:$0xff]  ;;  %v45_v26 = vld [vmem:[#allocation2 + $0x40] sm:$0xff] }
  0x19   :  { %363 = vmatprep.subr.bf16.mxu0 %v491_v0  ;;  %v367_v18 = vpack.c.bf16 %v42_v15, %v41_v14  ;;  %v63_v22 = vand.u32 2147483647, %v43_v20  ;;  %v64_v23 = vand.u32 2147483647, %v44_v21  ;;  %v370_v24 = vpack.c.bf16 %v44_v21, %v43_v20  ;;  %v46_v27 = vld [vmem:[#allocation2 + $0x48] sm:$0xff]  ;;  %v47_v32 = vld [vmem:[#allocation2 + $0x50] sm:$0xff] }
  0x1a   :  { %386 = vmatpush3.bf16.xpose.msra.mxu1 %v385_v9  ;;  %v391_v19 = vpack.c.bf16 %v62_v17, %v61_v16  ;;  %v65_v28 = vand.u32 2147483647, %v45_v26  ;;  %v66_v29 = vand.u32 2147483647, %v46_v27  ;;  %v373_v30 = vpack.c.bf16 %v46_v27, %v45_v26  ;;  %v48_v33 = vld [vmem:[#allocation2 + $0x58] sm:$0xff]  ;;  %v49_v38 = vld [vmem:[#allocation2 + $0x60] sm:$0xff] }
  0x1b   :  { %387 = vmatprep.subr.bf16.mxu1 %v491_v0  ;;  %v394_v25 = vpack.c.bf16 %v64_v23, %v63_v22  ;;  %v67_v34 = vand.u32 2147483647, %v47_v32  ;;  %v68_v35 = vand.u32 2147483647, %v48_v33  ;;  %v376_v36 = vpack.c.bf16 %v48_v33, %v47_v32  ;;  %v50_v39 = vld [vmem:[#allocation2 + $0x68] sm:$0xff]  ;;  %v51_v44 = vld [vmem:[#allocation2 + $0x70] sm:$0xff] }
  0x1c   :  { %v397_v31 = vpack.c.bf16 %v66_v29, %v65_v28  ;;  %v69_v40 = vand.u32 2147483647, %v49_v38  ;;  %v70_v41 = vand.u32 2147483647, %v50_v39  ;;  %v379_v42 = vpack.c.bf16 %v50_v39, %v49_v38  ;;  %v52_v45 = vld [vmem:[#allocation2 + $0x78] sm:$0xff] }
  0x1d   :  { %v400_v37 = vpack.c.bf16 %v68_v35, %v67_v34  ;;  %v71_v46 = vand.u32 2147483647, %v51_v44  ;;  %v72_v47 = vand.u32 2147483647, %v52_v45  ;;  %v382_v48 = vpack.c.bf16 %v52_v45, %v51_v44  ;;  %v35_v49 = vld [vmem:[%s587_s0] sm:$0xff]  ;;  %s494_s0 = smov [#allocation5]  }
  0x1e   :  { %v403_v43 = vpack.c.bf16 %v70_v41, %v69_v40  ;;  %v36_v50 = vld [vmem:[%s588_s1] sm:$0xff]  ;;  %s232_s12 = sshll.u32 %s494_s0, 4  ;;  %s495_s1 = smov [#allocation6]   ;;  %s233_s12 = int_to_ptr.vmem [resolvable:$true] %s232_s12 }
  0x1f   :  { %v406_v51 = vpack.c.bf16 %v72_v47, %v71_v46  ;;  %v53_v52 = vadd.f32 %v36_v50, %v35_v49  ;;  %v55_v53 = vsub.f32 %v36_v50, %v35_v49  ;;  %v255_v59 = vld [vmem:[%s590_s3] ss:$0 sm:$0xff]  ;;  %s242_s13 = sshll.u32 %s495_s1, 4  ;;  %s438_s14 = scalar_lea.vmem %s233_s12, 128  ;;  %s243_s13 = int_to_ptr.vmem [resolvable:$true] %s242_s13 }
  0x20   :  { %365 = vmatpush3.bf16.xpose.msra.mxu0 %v364_v12  ;;  %p439_p8 = scmp.ne.s32.totalorder %s233_s12, %s438_s14  ;;  %p443_p9 = scmp.lt.s32.totalorder %s233_s12, %s233_s12 }
  0x21   :  { %366 = vmatprep.subr.bf16.mxu0 %v491_v0  ;;  %v54_v54 = vmul.f32 0.5, %v53_v52  ;;  %v56_v55 = vmul.f32 0.5, %v55_v53  ;;  %p444_p10 = scmp.lt.s32.totalorder %s438_s14, %s438_s14 }
  0x22   :  { %389 = vmatpush3.bf16.xpose.msra.mxu1 %v388_v13 }
  0x23   :  { %390 = vmatprep.subr.bf16.mxu1 %v491_v0  ;;  %p445_p11 = por %p444_p10, %p443_p9 }
  0x25   :  { %p446_p12 = pnand %p445_p11, %p439_p8 }
  0x28   :  { %368 = vmatpush3.bf16.xpose.msra.mxu0 %v367_v18 }
  0x29   :  { %369 = vmatprep.subr.bf16.mxu0 %v491_v0 }
  0x2a   :  { %392 = vmatpush3.bf16.xpose.msra.mxu1 %v391_v19 }
  0x2b   :  { %393 = vmatprep.subr.bf16.mxu1 %v491_v0 }
  0x30   :  { %371 = vmatpush3.bf16.xpose.msra.mxu0 %v370_v24 }
  0x31   :  { %372 = vmatprep.subr.bf16.mxu0 %v491_v0 }
  0x32   :  { %395 = vmatpush3.bf16.xpose.msra.mxu1 %v394_v25 }
  0x33   :  { %396 = vmatprep.subr.bf16.mxu1 %v491_v0 }
  0x38   :  { %374 = vmatpush3.bf16.xpose.msra.mxu0 %v373_v30 }
  0x39   :  { %375 = vmatprep.subr.bf16.mxu0 %v491_v0 }
  0x3a   :  { %398 = vmatpush3.bf16.xpose.msra.mxu1 %v397_v31 }
  0x3b   :  { %399 = vmatprep.subr.bf16.mxu1 %v491_v0 }
  0x40   :  { %377 = vmatpush3.bf16.xpose.msra.mxu0 %v376_v36 }
  0x41   :  { %378 = vmatprep.subr.bf16.mxu0 %v491_v0 }
  0x42   :  { %401 = vmatpush3.bf16.xpose.msra.mxu1 %v400_v37 }
  0x43   :  { %402 = vmatprep.subr.bf16.mxu1 %v491_v0 }
  0x48   :  { %380 = vmatpush3.bf16.xpose.msra.mxu0 %v379_v42 }
  0x49   :  { %381 = vmatprep.subr.bf16.mxu0 %v491_v0 }
  0x4a   :  { %404 = vmatpush3.bf16.xpose.msra.mxu1 %v403_v43 }
  0x4b   :  { %405 = vmatprep.subr.bf16.mxu1 %v491_v0 }
  0x50   :  { %383 = vmatpush3.bf16.xpose.msra.mxu0 %v382_v48 }
  0x52   :  { %407 = vmatpush3.bf16.xpose.msra.mxu1 %v406_v51 }
  0x57   :  { %323 = vmatmul.mubr.f32.vlgmr.msra.gmra.mrb[0].mxu0 %v54_v54 }
  0x59   :  { %358 = vmatmul.mubr.f32.vlgmr.msra.gmra.mrb[0].mxu1 %v56_v55 }
 0x12a   :  { %v139_v56 = vpop.f32.mrb[0].mxu0 }
 0x12b   :  { %v324_v57 = vpop.f32.mrb[1].mxu0 }
 0x12c   :  { %v209_v58 = vpop.f32.mrb[0].mxu1 }
 0x12d   :  { %v214_v60 = vsub.f32 %v139_v56, %v209_v58  ;;  %v223_v61 = vadd.f32 %v209_v58, %v139_v56  ;;  %v359_v62 = vpop.f32.mrb[1].mxu1 }
 0x12f   :  { %v221_v63 = vadd.f32 %v255_v59, %v214_v60  ;;  %v224_v0 = vadd.f32 %v255_v59, %v223_v61 }
 0x131   :  { %222 = vst [vmem:[#allocation5] sm:$0xff] %v221_v63  ;;  %225 = vst [vmem:[#allocation6] sm:$0xff] %v224_v0 }
 0x132   :  { %449 = shalt.err (!%p446_p12)
}
 0x133   :  { %s450_s16 = scalar_lea.hbm %s591_s4, 128 }
 0x134   :  { %p451_p13 = scmp.ne.s32.totalorder %s591_s4, %s450_s16  ;;  %p454_p0 = scmp.lt.u32.totalorder %s450_s16, %s591_s4 }
 0x136   :  { %p456_p1 = pnand %p454_p0, %p451_p13 }
 0x138   :  { %459 = shalt.err (!%p456_p1)
}
 0x139   :  { %235 = dma.vmem_to_hbm [thread:$0]  %s233_s12, 128, %s591_s4, [#allocation4]  }
 0x13a   :  { %s460_s23 = scalar_lea.vmem %s243_s13, 128  ;;  %p465_p3 = scmp.lt.s32.totalorder %s243_s13, %s243_s13 }
 0x13b   :  { %p461_p2 = scmp.ne.s32.totalorder %s243_s13, %s460_s23  ;;  %p466_p4 = scmp.lt.s32.totalorder %s460_s23, %s460_s23 }
 0x13d   :  { %p467_p5 = por %p466_p4, %p465_p3 }
 0x13f   :  { %p468_p6 = pnand %p467_p5, %p461_p2 }
 0x141   :  { %471 = shalt.err (!%p468_p6)
}
 0x142   :  { %s472_s26 = scalar_lea.hbm %s592_s5, 128 }
 0x143   :  { %p473_p7 = scmp.ne.s32.totalorder %s592_s5, %s472_s26  ;;  %p476_p8 = scmp.lt.u32.totalorder %s472_s26, %s592_s5 }
 0x145   :  { %p478_p9 = pnand %p476_p8, %p473_p7 }
 0x147   :  { %481 = shalt.err (!%p478_p9)
}
 0x148   :  { %245 = dma.vmem_to_hbm [thread:$0]  %s243_s13, 128, %s592_s5, [#allocation7]  }
 0x149   :  { %484 = dma.done.wait [#allocation4], 128  }
 0x14a   :  { %485 = vsyncadd [#allocation4], 4294967168 }
 0x14b   :  { %486 = dma.done.wait [#allocation7], 128  }
 0x14c   :  { %487 = vsyncadd [#allocation7], 4294967168 }
 0x14d   :  { %252 = vsyncpa [#allocation3], 1 }
 0x14e   :  { %253 = vsyncpa [#allocation4], 1 }
 0x14f   :  { %254 = vsyncpa [#allocation7], 1 }

</bundles_post_ra>
